<compile_context>
chip_gen: v7x
topology: tpu7x:2x2x1
jax: 0.10.0
libtpu: 0.0.40
codegen_flags: <defaults>
</compile_context>

<pallas_src>
from functools import partial

import numpy as np
import jax
import jax.numpy as jnp
from jax import lax
from jax.experimental import pallas as pl
from jax.experimental.pallas import tpu as pltpu

KERNEL_SIZES = (2, 3, 4, 5)
KMAX = max(KERNEL_SIZES)          # number of conv taps (offsets 0..KMAX-1)


def _round_up(x, m):
    return (x + m - 1) // m * m


def _cdiv(a, b):
    return (a + b - 1) // b


def textcnn_kernel(x_ref, wcat_ref, bcat_ref, thr_ref, fcw_ref, fcb_ref,
                   out_ref, *, bb, t_pad, embed_dim, w_blk):
    """One batch block per grid step: im2col conv + ReLU + masked max-pool + FC."""
    E = embed_dim
    x = x_ref[...]                                         # (bb, l_pad, E) bf16

    # im2col: stack the KMAX tap-shifted slices along the contraction dim.
    # Shifts stay inside each example's l_pad rows (l_pad >= t_pad + KMAX - 1),
    # so taps never cross example boundaries.
    taps = [x[:, k:k + t_pad, :].reshape(bb * t_pad, E) for k in range(KMAX)]
    lhs = jnp.concatenate(taps, axis=1)                    # (bb*t_pad, KMAX*E) bf16

    # One fused MXU matmul: all four conv widths' activations at once.
    y = jnp.dot(lhs, wcat_ref[...], preferred_element_type=jnp.float32)
    z = y.reshape(bb, t_pad, w_blk) + bcat_ref[...][None]  # bias (pad cols = 0)
    z = jnp.maximum(z, 0.0)                                # ReLU

    # Mask time steps past each width's valid range (and the zero-padded tail
    # rows t >= L).  Post-ReLU values are >= 0, so zeroing never changes the
    # global max.  thr is host-precomputed: thr[c] = L - width(c); -1 for pad
    # columns.  (Do NOT remove the ReLU above without revisiting this mask.)
    t_idx = lax.broadcasted_iota(jnp.int32, (t_pad, w_blk), 0)
    valid = t_idx <= thr_ref[...]                          # (t_pad, w_blk) bool
    z = jnp.where(valid[None], z, 0.0)

    pooled = jnp.max(z, axis=1)                            # (bb, w_blk); pad cols stay 0

    # TODO(synk): training-mode dropout omitted (eval-mode dropout is identity).
    logits = jnp.dot(pooled.astype(jnp.bfloat16), fcw_ref[...],
                     preferred_element_type=jnp.float32) + fcb_ref[...]
    out_ref[0] = logits.astype(out_ref.dtype)              # lane-dense (bb, out_pad)


def pack_params(params, embed_dim, kernel_num, class_num):
    """Host-side, ONE-TIME packing of weights into the im2col layout."""
    C, E = kernel_num, embed_dim
    w_blk = max(128, _round_up(4 * C, 128))        # conv feature columns (lane-padded)
    w_cat = np.zeros((KMAX * E, w_blk), np.float32)
    b_cat = np.zeros((1, w_blk), np.float32)
    for wi, K in enumerate(KERNEL_SIZES):
        w = np.asarray(params[f"w{K}"])            # (K, E, C)
        b = np.asarray(params[f"b{K}"])            # (1, C)
        col0 = wi * C
        for k in range(K):                         # rows for taps >= K stay zero
            w_cat[k * E:(k + 1) * E, col0:col0 + C] = w[k]
        b_cat[:, col0:col0 + C] = b

    out_pad = max(128, _round_up(class_num, 128))
    fcw = np.zeros((w_blk, out_pad), np.float32)
    fcw[:4 * C, :class_num] = np.asarray(params["fcw"])
    fcb = np.zeros((1, out_pad), np.float32)
    fcb[:, :class_num] = np.asarray(params["fcb"])

    return dict(w_cat=jnp.asarray(w_cat, jnp.bfloat16),
                b_cat=jnp.asarray(b_cat, jnp.float32),
                fcw=jnp.asarray(fcw, jnp.bfloat16),
                fcb=jnp.asarray(fcb, jnp.float32),
                w_blk=w_blk, out_pad=out_pad)


def _vmem_footprint(bb, l_pad, t_pad, E, w_blk, out_pad):
    """Rough per-step VMEM bytes (double-buffered blocks + in-kernel temps)."""
    x_blk = 2 * bb * l_pad * E * 2                         # bf16 x block, 2 buffers
    lhs = bb * t_pad * KMAX * E * 2                        # bf16 im2col LHS
    acts = 2 * bb * t_pad * w_blk * 4                      # f32 conv result + masked copy
    wts = 2 * (KMAX * E * w_blk * 2 + w_blk * 8            # conv weights + bias + thr
               + w_blk * out_pad * 2 + out_pad * 4)        # fc weight + fc bias
    out = 2 * bb * out_pad * 4
    return x_blk + lhs + acts + wts + out


def make_textcnn_forward(params, *, block_b=128, vmem_budget=24 << 20):
    """Returns a jitted forward(tokens) -> (B, class_num) logits closure."""
    E = params["embed"].shape[1]
    C = params["w2"].shape[-1]
    class_num = params["fcw"].shape[-1]
    packed = pack_params(params, E, C, class_num)          # packed once, reused
    w_cat, b_cat = packed["w_cat"], packed["b_cat"]
    fcw, fcb = packed["fcw"], packed["fcb"]
    w_blk, out_pad = packed["w_blk"], packed["out_pad"]
    embed_bf16 = params["embed"].astype(jnp.bfloat16)      # gather directly in bf16

    # TODO(synk): fully fusing the embedding gather into the kernel (scalar-
    # prefetched token ids + Element-indexed BlockSpec) would remove one more
    # HBM pass; here gather + pad + kernel are at least fused under one jit.
    @jax.jit
    def forward(tokens):
        B, L = tokens.shape
        t_pad = _round_up(max(L, 1), 16)                   # bf16 sublane-pack friendly
        l_pad = _round_up(t_pad + KMAX - 1, 8)             # room for the tap shifts

        # Batch tile from the VMEM footprint model; keep an EVEN number of
        # grid steps (>= 2 when B > 1) so v7x megacore shards the parallel
        # axis across both TensorCores (negligible cost on single-TC chips).
        bb = max(1, min(block_b, B))
        while bb > 1 and _vmem_footprint(bb, l_pad, t_pad, E, w_blk, out_pad) > vmem_budget:
            bb //= 2
        if B > 1:
            bb = min(bb, _cdiv(B, 2))
        n_blocks = _cdiv(B, bb)
        if n_blocks > 1 and n_blocks % 2:
            n_blocks += 1
        b_pad = n_blocks * bb

        foot = _vmem_footprint(bb, l_pad, t_pad, E, w_blk, out_pad)
        vmem_limit = int(min(48 << 20, max(32 << 20, 2 * foot)))

        # Host-precomputed per-column valid-time threshold (avoids an in-kernel
        # integer divide per element): column c belongs to conv width 2 + c//C.
        cols = np.arange(w_blk)
        thr = np.where(cols < 4 * C, L - 2 - cols // C, -1).astype(np.int32)[None, :]
        thr = jnp.asarray(thr)

        x = embed_bf16[tokens]                             # (B, L, E) bf16 gather
        x = jnp.pad(x, ((0, b_pad - B), (0, l_pad - L), (0, 0)))

        kern = partial(textcnn_kernel, bb=bb, t_pad=t_pad, embed_dim=E, w_blk=w_blk)
        out = pl.pallas_call(
            kern,
            out_shape=jax.ShapeDtypeStruct((n_blocks, bb, out_pad), jnp.float32),
            grid=(n_blocks,),
            in_specs=[
                pl.BlockSpec((bb, l_pad, E), lambda i: (i, 0, 0)),
                # TODO(synk): grid-invariant weight blocks could drop to a
                # single buffer via pipeline_mode=pl.Buffered(1); kept default
                # double-buffering here for maximum compile portability.
                pl.BlockSpec(w_cat.shape, lambda i: (0, 0)),
                pl.BlockSpec(b_cat.shape, lambda i: (0, 0)),
                pl.BlockSpec(thr.shape, lambda i: (0, 0)),
                pl.BlockSpec(fcw.shape, lambda i: (0, 0)),
                pl.BlockSpec(fcb.shape, lambda i: (0, 0)),
            ],
            out_specs=pl.BlockSpec((1, bb, out_pad), lambda i: (i, 0, 0)),
            compiler_params=pltpu.CompilerParams(
                dimension_semantics=("parallel",),
                vmem_limit_bytes=vmem_limit),
        )(x, w_cat, b_cat, thr, fcw, fcb)

        return out.reshape(b_pad, out_pad)[:B, :class_num]

    return forward


def ref_forward(x_emb, params):
    """Pure-JAX f32 reference mirroring the PyTorch forward (eval mode)."""
    B, L, E = x_emb.shape
    feats = []
    for K in KERNEL_SIZES:
        w = params[f"w{K}"]          # (K, E, C)
        b = params[f"b{K}"]          # (1, C)
        T = L - K + 1
        acc = jnp.zeros((B, T, w.shape[-1]), dtype=jnp.float32)
        for k in range(K):
            acc = acc + jnp.einsum("bte,ec->btc", x_emb[:, k:k + T, :], w[k])
        acc = jax.nn.relu(acc + b[None])
        feats.append(jnp.max(acc, axis=1))
    feat = jnp.concatenate(feats, axis=1)
    return feat @ params["fcw"] + params["fcb"]


def init_params(key, *, voc_size, embed_dim, kernel_num, class_num):
    keys = jax.random.split(key, 2 + 2 * len(KERNEL_SIZES) + 2)
    params = {}
    params["embed"] = 0.1 * jax.random.normal(
        keys[0], (voc_size, embed_dim), dtype=jnp.float32)
    i = 1
    for K in KERNEL_SIZES:
        # PyTorch Conv2d weight (C, 1, K, E) stored here as (K, E, C)
        params[f"w{K}"] = 0.1 * jax.random.normal(
            keys[i], (K, embed_dim, kernel_num), dtype=jnp.float32)
        params[f"b{K}"] = 0.1 * jax.random.normal(
            keys[i + 1], (1, kernel_num), dtype=jnp.float32)
        i += 2
    params["fcw"] = 0.1 * jax.random.normal(
        keys[i], (len(KERNEL_SIZES) * kernel_num, class_num), dtype=jnp.float32)
    params["fcb"] = 0.1 * jax.random.normal(
        keys[i + 1], (1, class_num), dtype=jnp.float32)
    return params


if __name__ == "__main__":
    # Small, module-consistent shapes.
    B, L = 2, 16            # batch, sequence length
    VOCAB = 20
    EMBED_DIM = 32
    KERNEL_NUM = 8
    CLASS_NUM = 2

    key = jax.random.PRNGKey(0)
    k_param, k_tok = jax.random.split(key)
    params = init_params(k_param, voc_size=VOCAB, embed_dim=EMBED_DIM,
                         kernel_num=KERNEL_NUM, class_num=CLASS_NUM)

    tokens = jax.random.randint(k_tok, (B, L), 0, VOCAB, dtype=jnp.int32)

    forward = make_textcnn_forward(params)
    logits = jax.block_until_ready(forward(tokens))

    ref = ref_forward(params["embed"][tokens], params)     # f32 reference
    assert logits.shape == (B, CLASS_NUM)
    # bf16 embedding/matmul inputs with f32 accumulation -> loosened tolerance.
    assert jnp.allclose(logits, ref, atol=2e-2, rtol=2e-2), (logits, ref)
    print("KERNEL_OK")
</pallas_src>

<mosaic_0001>
module attributes {stable_mosaic.version = 11 : i64} {
  func.func @textcnn_kernel(%arg0: i32, %arg1: memref<1x24x32xbf16, #tpu.memory_space<vmem>>, %arg2: memref<160x128xbf16, #tpu.memory_space<vmem>>, %arg3: memref<1x128xf32, #tpu.memory_space<vmem>>, %arg4: memref<1x128xi32, #tpu.memory_space<vmem>>, %arg5: memref<128x128xbf16, #tpu.memory_space<vmem>>, %arg6: memref<1x128xf32, #tpu.memory_space<vmem>>, %arg7: memref<1x1x128xf32, #tpu.memory_space<vmem>>) attributes {dimension_semantics = [#tpu.dimension_semantics<parallel>], iteration_bounds = array<i64: 2>, scalar_prefetch = 0 : i64, scratch_operands = 0 : i64, tpu.core_type = #tpu.core_type<tc>, window_params = [{transform_indices = @transform_0, window_bounds = array<i64: 1, 24, 32>}, {pipeline_mode = #tpu.pipeline_mode<synchronous>, transform_indices = @transform_1, window_bounds = array<i64: 160, 128>}, {pipeline_mode = #tpu.pipeline_mode<synchronous>, transform_indices = @transform_2, window_bounds = array<i64: 1, 128>}, {pipeline_mode = #tpu.pipeline_mode<synchronous>, transform_indices = @transform_3, window_bounds = array<i64: 1, 128>}, {pipeline_mode = #tpu.pipeline_mode<synchronous>, transform_indices = @transform_4, window_bounds = array<i64: 128, 128>}, {pipeline_mode = #tpu.pipeline_mode<synchronous>, transform_indices = @transform_5, window_bounds = array<i64: 1, 128>}, {transform_indices = @transform_6, window_bounds = array<i64: 1, 1, 128>}]} {
    %c0 = arith.constant 0 : index
    %c0_0 = arith.constant 0 : index
    %c0_1 = arith.constant 0 : index
    %0 = vector.load %arg1[%c0, %c0_0, %c0_1] : memref<1x24x32xbf16, #tpu.memory_space<vmem>>, vector<1x24x32xbf16>
    %1 = vector.extract_strided_slice %0 {offsets = [0, 0, 0], sizes = [1, 16, 32], strides = [1, 1, 1]} : vector<1x24x32xbf16> to vector<1x16x32xbf16>
    %2 = vector.shape_cast %1 : vector<1x16x32xbf16> to vector<16x32xbf16>
    %3 = vector.extract_strided_slice %0 {offsets = [0, 1, 0], sizes = [1, 16, 32], strides = [1, 1, 1]} : vector<1x24x32xbf16> to vector<1x16x32xbf16>
    %4 = vector.shape_cast %3 : vector<1x16x32xbf16> to vector<16x32xbf16>
    %5 = vector.extract_strided_slice %0 {offsets = [0, 2, 0], sizes = [1, 16, 32], strides = [1, 1, 1]} : vector<1x24x32xbf16> to vector<1x16x32xbf16>
    %6 = vector.shape_cast %5 : vector<1x16x32xbf16> to vector<16x32xbf16>
    %7 = vector.extract_strided_slice %0 {offsets = [0, 3, 0], sizes = [1, 16, 32], strides = [1, 1, 1]} : vector<1x24x32xbf16> to vector<1x16x32xbf16>
    %8 = vector.shape_cast %7 : vector<1x16x32xbf16> to vector<16x32xbf16>
    %9 = vector.extract_strided_slice %0 {offsets = [0, 4, 0], sizes = [1, 16, 32], strides = [1, 1, 1]} : vector<1x24x32xbf16> to vector<1x16x32xbf16>
    %10 = vector.shape_cast %9 : vector<1x16x32xbf16> to vector<16x32xbf16>
    %11 = tpu.concatenate %2, %4, %6, %8, %10 in 1 : vector<16x32xbf16>, vector<16x32xbf16>, vector<16x32xbf16>, vector<16x32xbf16>, vector<16x32xbf16> -> vector<16x160xbf16>
    %c0_2 = arith.constant 0 : index
    %c0_3 = arith.constant 0 : index
    %12 = vector.load %arg2[%c0_2, %c0_3] : memref<160x128xbf16, #tpu.memory_space<vmem>>, vector<160x128xbf16>
    %cst = arith.constant dense<0.000000e+00> : vector<16x128xf32>
    %13 = tpu.matmul %11, %12, %cst {dimension_numbers = #tpu.dot_dimension_numbers<[1], [0], [0], [1], [0, 0, 1, 1], [], []>} : vector<16x160xbf16>, vector<160x128xbf16>, vector<16x128xf32> -> vector<16x128xf32>
    %14 = vector.shape_cast %13 : vector<16x128xf32> to vector<1x16x128xf32>
    %c0_4 = arith.constant 0 : index
    %c0_5 = arith.constant 0 : index
    %15 = vector.load %arg3[%c0_4, %c0_5] : memref<1x128xf32, #tpu.memory_space<vmem>>, vector<1x128xf32>
    %16 = vector.shape_cast %15 : vector<1x128xf32> to vector<1x1x128xf32>
    %17 = vector.broadcast %16 : vector<1x1x128xf32> to vector<1x16x128xf32>
    %18 = arith.addf %14, %17 : vector<1x16x128xf32>
    %cst_6 = arith.constant 0.000000e+00 : f32
    %19 = vector.broadcast %cst_6 : f32 to vector<1x16x128xf32>
    %20 = arith.maximumf %18, %19 : vector<1x16x128xf32>
    %21 = tpu.iota {dimensions = array<i32: 0>} : vector<16x128xi32>
    %c0_7 = arith.constant 0 : index
    %c0_8 = arith.constant 0 : index
    %22 = vector.load %arg4[%c0_7, %c0_8] : memref<1x128xi32, #tpu.memory_space<vmem>>, vector<1x128xi32>
    %23 = vector.broadcast %22 : vector<1x128xi32> to vector<16x128xi32>
    %24 = arith.cmpi sle, %21, %23 : vector<16x128xi32>
    %25 = vector.shape_cast %24 : vector<16x128xi1> to vector<1x16x128xi1>
    %cst_9 = arith.constant 0.000000e+00 : f32
    %26 = vector.broadcast %cst_9 : f32 to vector<1x16x128xf32>
    %27 = arith.select %25, %20, %26 : vector<1x16x128xi1>, vector<1x16x128xf32>
    %cst_10 = arith.constant dense<0xFF800000> : vector<1x128xf32>
    %28 = vector.multi_reduction <maximumf>, %27, %cst_10 [1] : vector<1x16x128xf32> to vector<1x128xf32>
    %29 = arith.truncf %28 : vector<1x128xf32> to vector<1x128xbf16>
    %c0_11 = arith.constant 0 : index
    %c0_12 = arith.constant 0 : index
    %30 = vector.load %arg5[%c0_11, %c0_12] : memref<128x128xbf16, #tpu.memory_space<vmem>>, vector<128x128xbf16>
    %cst_13 = arith.constant dense<0.000000e+00> : vector<1x128xf32>
    %31 = tpu.matmul %29, %30, %cst_13 {dimension_numbers = #tpu.dot_dimension_numbers<[1], [0], [0], [1], [0, 0, 1, 1], [], []>} : vector<1x128xbf16>, vector<128x128xbf16>, vector<1x128xf32> -> vector<1x128xf32>
    %c0_14 = arith.constant 0 : index
    %c0_15 = arith.constant 0 : index
    %32 = vector.load %arg6[%c0_14, %c0_15] : memref<1x128xf32, #tpu.memory_space<vmem>>, vector<1x128xf32>
    %33 = arith.addf %31, %32 : vector<1x128xf32>
    %c0_16 = arith.constant 0 : index
    %c0_17 = arith.constant 0 : index
    %c0_18 = arith.constant 0 : index
    %34 = vector.load %arg7[%c0_16, %c0_17, %c0_18] : memref<1x1x128xf32, #tpu.memory_space<vmem>>, vector<1x1x128xf32>
    %35 = vector.shape_cast %34 : vector<1x1x128xf32> to vector<1x128xf32>
    %36 = vector.shape_cast %33 : vector<1x128xf32> to vector<1x1x128xf32>
    tpu.vector_store %arg7[%c0_16, %c0_17, %c0_18], %36 {strides = array<i32>} : memref<1x1x128xf32, #tpu.memory_space<vmem>>, vector<1x1x128xf32>,
    return
  }
  func.func @transform_0(%arg0: i32) -> (i32, i32, i32) {
    %c0_i32 = arith.constant 0 : i32
    %c0_i32_0 = arith.constant 0 : i32
    %c0_i32_1 = arith.constant 0 : i32
    return %arg0, %c0_i32, %c0_i32_0 : i32, i32, i32
  }
  func.func @transform_1(%arg0: i32) -> (i32, i32) {
    %c0_i32 = arith.constant 0 : i32
    %c0_i32_0 = arith.constant 0 : i32
    %c0_i32_1 = arith.constant 0 : i32
    return %c0_i32, %c0_i32_0 : i32, i32
  }
  func.func @transform_2(%arg0: i32) -> (i32, i32) {
    %c0_i32 = arith.constant 0 : i32
    %c0_i32_0 = arith.constant 0 : i32
    %c0_i32_1 = arith.constant 0 : i32
    return %c0_i32, %c0_i32_0 : i32, i32
  }
  func.func @transform_3(%arg0: i32) -> (i32, i32) {
    %c0_i32 = arith.constant 0 : i32
    %c0_i32_0 = arith.constant 0 : i32
    %c0_i32_1 = arith.constant 0 : i32
    return %c0_i32, %c0_i32_0 : i32, i32
  }
  func.func @transform_4(%arg0: i32) -> (i32, i32) {
    %c0_i32 = arith.constant 0 : i32
    %c0_i32_0 = arith.constant 0 : i32
    %c0_i32_1 = arith.constant 0 : i32
    return %c0_i32, %c0_i32_0 : i32, i32
  }
  func.func @transform_5(%arg0: i32) -> (i32, i32) {
    %c0_i32 = arith.constant 0 : i32
    %c0_i32_0 = arith.constant 0 : i32
    %c0_i32_1 = arith.constant 0 : i32
    return %c0_i32, %c0_i32_0 : i32, i32
  }
  func.func @transform_6(%arg0: i32) -> (i32, i32, i32) {
    %c0_i32 = arith.constant 0 : i32
    %c0_i32_0 = arith.constant 0 : i32
    %c0_i32_1 = arith.constant 0 : i32
    return %arg0, %c0_i32, %c0_i32_0 : i32, i32, i32
  }
}

</mosaic_0001>

<bundles_post_ra>
// kernel: forward.1
= control target key start
LH: loop header
LB: loop body
LE: loop exit
PB: predicated region body
PF: predicated region fallthrough
CT: control target
= control target key end

     0   :  { %11 = vsyncpa [#allocation3], 0  ;;  %s1055_s0 = inlined_call_operand.vmem [shape: bf16[2,24,32], index: 0, kind: input, shape index: {}]   ;;  %s1056_s1 = inlined_call_operand.vmem [shape: bf16[160,128], index: 1, kind: input, shape index: {}]   ;;  %s1057_s2 = inlined_call_operand.vmem [shape: f32[1,128], index: 2, kind: input, shape index: {}]   ;;  %s1058_s3 = inlined_call_operand.vmem [shape: s32[1,128], index: 3, kind: input, shape index: {}]   ;;  %s1059_s4 = inlined_call_operand.vmem [shape: bf16[128,128], index: 4, kind: input, shape index: {}]   ;;  %s1060_s5 = inlined_call_operand.vmem [shape: f32[1,128], index: 5, kind: input, shape index: {}]   ;;  %s1061_s6 = inlined_call_operand.hbm [shape: f32[2,1,128], index: 6, kind: output, shape index: {}]  }
   0x1   :  { %13 = vsyncpa [#allocation3 + $0x1], 0  ;;  %s869_s21 = smov 0   ;;  %s871_s22 = smov 0  }
   0x2   :  { %s873_s23 = smov 0   ;;  %s875_s24 = smov 0  }
   0x3 LB: > { %s890_s25 = sadd.s32 4294967295, %s825_s24   ;;  %s637_s26 = sadd.s32 4294967294, %s825_s24   ;;  %s825_s24 = sphi %s875_s24, %s1067_s24   ;;  %s821_s23 = sphi %s873_s23, %s1066_s23   ;;  %s817_s22 = sphi %s871_s22, %s1065_s22   ;;  %s813_s21 = sphi %s869_s21, %s1064_s21  }
   0x4   : > { %s894_s27 = sadd.s32 1, %s825_s24   ;;  %s157_s28 = sadd.s32 1, %s821_s23 }
   0x5   : > { %s154_s29 = ssub.s32 %s825_s24, %s894_s27  ;;  %p167_p0 = scmp.ne.s32.totalorder %s821_s23, %s817_s22 }
   0x6   : > { %p155_p1 = scmp.eq.s32.totalorder %s154_s29, 0  ;;  %p168_p2 = scmp.eq.s32.totalorder %s890_s25, 1 }
   0x7   : > { %p173_p3 = scmp.ne.s32.totalorder %s817_s22, %s813_s21  ;;  %p174_p4 = scmp.eq.s32.totalorder %s637_s26, 1 }
   0x8   : > { %s905_s30 = scalar_select %p155_p1, %s821_s23, %s157_s28  }
   0x9   : > { %p907_p5 = por %p168_p2, %p167_p0  ;;  %p911_p6 = por %p174_p4, %p173_p3 }
   0xa   : > { %p640_p7 = scmp.ge.s32.totalorder %s825_s24, 1  ;;  %p215_p8 = scmp.lt.s32.totalorder %s825_s24, 3 }
   0xc   : > { %p216_p9 = pnand %p640_p7, %p215_p8 }
   0xd   : > { %p244_p10 = scmp.lt.s32.totalorder (!%p216_p9), %s890_s25, 1  ;;  %v827_v0 = vmov (!%p216_p9), 0   ;;  %v745_v1 = vld [vmem:[%s1056_s1] sm:$0xff] (!%p216_p9)   ;;  %v746_v2 = vld [vmem:[%s1056_s1 + $0x8] sm:$0xff] (!%p216_p9)   ;;  %vm261_vm0 = vsmask.f32 (!%p216_p9), 7424  ;;  %v443_v49 = vlaneseq (!%p216_p9) }
   0xe   : > { %219 = sbr.rel (%p216_p9) target bundleno = 618 (0x26a), region = 44  ;;  %391 = vmatprep.subr.bf16.mxu0 (!%p216_p9), %v827_v0  ;;  %v747_v3 = vld [vmem:[%s1056_s1 + $0x10] sm:$0xff] (!%p216_p9)   ;;  %vm282_vm1 = vsmask.f32 (!%p216_p9), 6400  ;;  %vm276_vm2 = vcmask (!%p216_p9), 1046528   ;;  %v748_v9 = vld [vmem:[%s1056_s1 + $0x18] sm:$0xff] (!%p216_p9)  }
   0xf   : > { %392 = vmatpush1.bf16.msra.mxu0 (!%p216_p9), %v745_v1  ;;  %vm294_vm3 = vcmask (!%p216_p9), 1045504   ;;  %v749_v24 = vld [vmem:[%s1056_s1 + $0x20] sm:$0xff] (!%p216_p9)   ;;  %v828_v27 = vmov (!%p216_p9), 0.0   ;;  %s829_s11 = smov (!%p216_p9), 32   ;;  %vm298_vm4 = vcmask (!%p216_p9), 261120   ;;  %v756_v30 = vld [vmem:[%s1059_s4 + $0x8] sm:$0xff] (!%p216_p9)  }
  0x10   : > { %393 = vmatprep.subr.bf16.mxu0 (!%p216_p9), %v827_v0  ;;  %677 = vmatprep.subr.bf16.mxu1 (!%p216_p9), %v828_v27  ;;  %v755_v28 = vld [vmem:[%s1059_s4] sm:$0xff] (!%p216_p9)   ;;  %s830_s14 = smov (!%p216_p9), 96   ;;  %v750_v32 = vld [vmem:[%s1056_s1 + $0x28] sm:$0xff] (!%p216_p9)   ;;  %v751_v33 = vld [vmem:[%s1056_s1 + $0x30] sm:$0xff] (!%p216_p9)   ;;  %vm301_vm5 = vcmask (!%p216_p9), 523264   ;;  %vm304_vm6 = vcmask (!%p216_p9), 785408  }
  0x11   : > { %678 = vmatpush3.bf16.msra.mxu1 (!%p216_p9), %v755_v28  ;;  %v752_v34 = vld [vmem:[%s1056_s1 + $0x38] sm:$0xff] (!%p216_p9)   ;;  %v753_v35 = vld [vmem:[%s1056_s1 + $0x40] sm:$0xff] (!%p216_p9)   ;;  %v754_v36 = vld [vmem:[%s1056_s1 + $0x48] sm:$0xff] (!%p216_p9)   ;;  %vm832_vm7 = vmmov (!%p216_p9), 0   ;;  %v444_v50 = vshrl.u32 (!%p216_p9), %v443_v49, 7  ;;  %s665_s15 = sshll.u32 (!%p216_p9), %s890_s25, 4 }
  0x12   : > { %679 = vmatprep.subr.bf16.mxu1 (!%p216_p9), %v828_v27  ;;  %v757_v43 = vld [vmem:[%s1059_s4 + $0x10] sm:$0xff] (!%p216_p9)   ;;  %v758_v44 = vld [vmem:[%s1059_s4 + $0x18] sm:$0xff] (!%p216_p9)   ;;  %v759_v45 = vld [vmem:[%s1059_s4 + $0x20] sm:$0xff] (!%p216_p9)   ;;  %693 = vmatprep.mubr.msk.bf16.mxu1 (!%p216_p9), %vm832_vm7, %v828_v27  ;;  %s1013_s20 = scalar_lea.hbm (!%p216_p9), %s1061_s6, %s665_s15  ;;  %s833_s28 = smov (!%p216_p9), [#allocation2]  }
  0x13   : > { %394 = vmatpush1.bf16.msra.mxu0 (!%p216_p9), %v746_v2  ;;  %v760_v46 = vld [vmem:[%s1059_s4 + $0x28] sm:$0xff] (!%p216_p9)   ;;  %v761_v47 = vld [vmem:[%s1059_s4 + $0x30] sm:$0xff] (!%p216_p9)   ;;  %v762_v48 = vld [vmem:[%s1059_s4 + $0x38] sm:$0xff] (!%p216_p9)   ;;  %v445_v53 = vadd.s32 (!%p216_p9), 8, %v444_v50  ;;  %s767_s29 = sshll.u32 (!%p216_p9), %s833_s28, 4  ;;  %s768_s29 = int_to_ptr.vmem [resolvable:$false] %s767_s29 }
  0x14   : > { %395 = vmatprep.subr.bf16.mxu0 (!%p216_p9), %v827_v0  ;;  %v655_v51 = vld [vmem:[%s1057_s2] ss:$0 sm:$0xff] (!%p216_p9) }
  0x15   : > { %s245_s9 = scalar_select %p244_p10, %s890_s25, 1  ;;  %680 = vmatpush3.bf16.msra.mxu1 %v756_v30  ;;  %v656_v55 = vld [vmem:[%s1058_s3] ss:$0 sm:$0xff] }
  0x16   : > { %681 = vmatprep.subr.bf16.mxu1 %v828_v27  ;;  %vm451_vm8 = vcmp.le.s32.totalorder %v444_v50, %v656_v55  ;;  %vm452_vm9 = vcmp.le.s32.totalorder %v445_v53, %v656_v55 }
  0x17   : > { %s697_s12 = smul.u32 12, %s245_s9  ;;  %396 = vmatpush1.bf16.msra.mxu0 %v747_v3  ;;  %s769_s9 = scalar_lea.vmem %s768_s29, 32 }
  0x18   : > { %397 = vmatprep.subr.bf16.mxu0 %v827_v0 }
  0x19   : > { %s248_s17 = scalar_lea.vmem %s1055_s0, %s697_s12  ;;  %682 = vmatpush3.bf16.msra.mxu1 %v757_v43  ;;  %s242_s12 = sand.u32 1, %s817_s22  }
  0x1a   : > { %v933_v4 = vld [vmem:[%s248_s17] sm:$0xff]   ;;  %v744_v5 = vld [vmem:[%s248_s17 + $0x8] ss:$0 sps:$4 sm:$0xff]   ;;  %s831_s17 = smov 64   ;;  %683 = vmatprep.subr.bf16.mxu1 %v828_v27  ;;  %s243_s16 = scalar_lea.vmem [#allocation2], %s242_s12 }
  0x1b   : > { %v263_v6 = vshrl.u32 %v933_v4, 16  ;;  %v265_v7 = vshll.u32 %v933_v4, 16  ;;  %v270_v8 = vshll.u32 %v744_v5, 16  ;;  %v286_v10 = vshrl.u32 %v744_v5, 16  ;;  %398 = vmatpush1.bf16.msra.mxu0 %v748_v9  ;;  %s570_s26 = scalar_lea.sflag [#allocation3], %s242_s12 }
  0x1c   : > { %v277_v15 = vrot.slane %v933_v4, 1  ;;  %v278_v16 = vrot.slane %v744_v5, 1  ;;  %v295_v21 = vrot.slane %v933_v4, 2  ;;  %v296_v22 = vrot.slane %v744_v5, 2  ;;  %399 = vmatprep.subr.bf16.mxu0 %v827_v0 }
  0x1d   : > { %v267_v11 = vrot.slane %v265_v7, 1  ;;  %v272_v12 = vrot.slane %v270_v8, 1  ;;  %v283_v13 = vrot.slane %v263_v6, 1  ;;  %v284_v14 = vrot.slane %v265_v7, 2  ;;  %684 = vmatpush3.bf16.msra.mxu1 %v758_v44 }
  0x1e   : > { %v288_v17 = vrot.slane %v286_v10, 1  ;;  %v289_v18 = vrot.slane %v270_v8, 2  ;;  %v297_v26 = vsel %vm294_vm3, %v295_v21, %v296_v22  ;;  %v279_v31 = vsel %vm276_vm2, %v277_v15, %v278_v16  ;;  %685 = vmatprep.subr.bf16.mxu1 %v828_v27  ;;  %v479_v8 = vld [vmem:[%s1060_s5] sm:$0x1] }
  0x1f   : > { %v268_v19 = vor.u32 %v267_v11, %v263_v6  ;;  %v285_v20 = vor.u32 %v284_v14, %v283_v13  ;;  %654 = vmatprep.mubr.msk.bf16.mxu0 %vm298_vm4, %v297_v26  ;;  %400 = vmatpush1.bf16.msra.mxu0 %v749_v24 }
  0x20   : > { %v290_v23 = vor.u32 %v289_v18, %v288_v17  ;;  %401 = vmatprep.subr.bf16.mxu0 %v827_v0 }
  0x21   : > { %v273_v25 = vsel %vm261_vm0, %v268_v19, %v272_v12  ;;  %686 = vmatpush3.bf16.msra.mxu1 %v759_v45 }
  0x22   : > { %274 = vrot.lane.b32.xlu0 %v273_v25, %s829_s11  ;;  %v291_v29 = vsel %vm282_vm1, %v285_v20, %v290_v23  ;;  %687 = vmatprep.subr.bf16.mxu1 %v828_v27 }
  0x23   : > { %292 = vrot.lane.b32.xlu1 %v291_v29, %s830_s14  ;;  %402 = vmatpush1.bf16.msra.mxu0 %v750_v32 }
  0x24   : > { %403 = vmatprep.subr.bf16.mxu0 %v827_v0 }
  0x25   : > { %688 = vmatpush3.bf16.msra.mxu1 %v760_v46 }
  0x26   : > { %280 = vrot.lane.b32.xlu0 %v279_v31, %s831_s17  ;;  %689 = vmatprep.subr.bf16.mxu1 %v828_v27  ;;  %s582_s17 = sshll.u32 %s243_s16, 4  ;;  %s1015_s17 = int_to_ptr.vmem [resolvable:$true] %s582_s17 }
  0x27   : > { %404 = vmatpush1.bf16.msra.mxu0 %v751_v33  ;;  %s763_s25 = scalar_lea.vmem %s1015_s17, 16  ;;  %p770_p0 = scmp.lt.s32.totalorder %s1015_s17, %s768_s29 }
  0x28   : > { %405 = vmatprep.subr.bf16.mxu0 %v827_v0  ;;  %p764_p11 = scmp.ne.s32.totalorder %s1015_s17, %s763_s25  ;;  %p771_p1 = scmp.lt.s32.totalorder %s769_s9, %s763_s25 }
  0x29   : > { %690 = vmatpush3.bf16.msra.mxu1 %v761_v47 }
  0x2a   : > { %691 = vmatprep.subr.bf16.mxu1 %v828_v27  ;;  %p765_p12 = pnand %p764_p11, %p907_p5  ;;  %p772_p2 = por %p771_p1, %p770_p0 }
  0x2b   : > { %406 = vmatpush1.bf16.msra.mxu0 %v752_v34 }
  0x2c   : > { %407 = vmatprep.subr.bf16.mxu0 %v827_v0  ;;  %p766_p13 = pneg %p765_p12 }
  0x2d   : > { %692 = vmatpush3.bf16.msra.mxu1 %v762_v48 }
  0x2e   : > { %p773_p3 = pnand %p772_p2, %p766_p13 }
  0x2f   : > { %408 = vmatpush1.bf16.msra.mxu0 %v753_v35 }
  0x30   : > { %409 = vmatprep.subr.bf16.mxu0 %v827_v0 }
  0x33   : > { %410 = vmatpush1.bf16.msra.mxu0 %v754_v36 }
  0x94   : > { %v275_v37 = vpop.permute.xlu0 %274 }
  0x95   : > { %v293_v38 = vpop.permute.xlu1 %292  ;;  %v300_v40 = vsel %vm298_vm4, %v933_v4, %v275_v37 }
  0x98   : > { %v281_v39 = vpop.permute.xlu0 %280 }
  0x99   : > { %v303_v41 = vsel %vm301_vm5, %v300_v40, %v281_v39 }
  0x9a   : > { %v306_v42 = vsel %vm304_vm6, %v303_v41, %v293_v38 }
  0x9b   : > { %424 = vmatmul.mubr.bf16.vlgmr.msra.gmra.mrb[0].mxu0 %v306_v42 }
 0x16e   : > { %v425_v52 = vpop.f32.mrb[0].mxu0 }
 0x16f   : > { %v439_v54 = vadd.f32 %v655_v51, %v425_v52  ;;  %v427_v56 = vpop.f32.mrb[1].mxu0 }
 0x170   : > { %v428_v57 = vpop.f32.mrb[2].mxu0 }
 0x171   : > { %v441_v58 = vmax.f32 %v439_v54, 0.0  ;;  %v440_v59 = vadd.f32 %v655_v51, %v428_v57  ;;  %v430_v60 = vpop.f32.mrb[3].mxu0 }
 0x173   : > { %v442_v61 = vmax.f32 %v440_v59, 0.0  ;;  %v453_v62 = vsel %vm451_vm8, %v441_v58, 0.0 }
 0x175   : > { %v454_v63 = vsel %vm452_vm9, %v442_v61, 0.0 }
 0x176   : > { %v455_v0 = vmax.f32 %v453_v62, %v454_v63 }
 0x178   : > { %v456_v1 = vrot.slane %v455_v0, 4 }
 0x17a   : > { %v457_v2 = vmax.f32 %v455_v0, %v456_v1 }
 0x17c   : > { %v458_v3 = vrot.slane %v457_v2, 2 }
 0x17e   : > { %v459_v4 = vmax.f32 %v457_v2, %v458_v3 }
 0x180   : > { %v460_v5 = vrot.slane %v459_v4, 1 }
 0x182   : > { %v461_v6 = vmax.f32 %v459_v4, %v460_v5 }
 0x184   : > { %v462_v7 = vpack.c.bf16 %v461_v6, %v461_v6 }
 0x186   : > { %694 = vmatmul.mubr.bf16.vlgmr.msra.gmra.mrb[0].mxu1 %v462_v7 }
 0x259   : > { %v562_v9 = vpop.f32.mrb[0].mxu1 }
 0x25a   : > { %v563_v10 = vadd.f32 %v562_v9, %v479_v8  ;;  %v695_v11 = vpop.f32.mrb[1].mxu1 }
 0x25b   : > { %v565_v12 = vpop.f32.mrb[2].mxu1 }
 0x25c   : > { %568 = vst [vmem:[%s243_s16] sm:$0x1] %v563_v10  ;;  %v696_v13 = vpop.f32.mrb[3].mxu1 }
 0x25d   : > { %776 = shalt.err (!%p773_p3)
}
 0x25e   : > { %s777_s10 = scalar_lea.hbm %s1013_s20, 16  ;;  %s781_s13 = scalar_lea.hbm %s1061_s6, 32 }
 0x25f   : > { %p778_p4 = scmp.ne.s32.totalorder %s1013_s20, %s777_s10  ;;  %p782_p9 = scmp.lt.u32.totalorder %s1013_s20, %s1061_s6 }
 0x260   : > { %p783_p10 = scmp.lt.u32.totalorder %s781_s13, %s777_s10  ;;  %p785_p12 = scmp.lt.u32.totalorder %s777_s10, %s1013_s20 }
 0x261   : > { %p779_p7 = pnand %p778_p4, %p907_p5 }
 0x262   : > { %p784_p11 = por %p783_p10, %p782_p9 }
 0x263   : > { %p780_p8 = pneg %p779_p7 }
 0x264   : > { %p786_p13 = por %p785_p12, %p784_p11 }
 0x266   : > { %p787_p0 = pnand %p786_p13, %p780_p8 }
 0x268   : > { %790 = shalt.err (!%p787_p0)
}
 0x269   : > { %698 = dma.vmem_to_hbm [thread:$0]  (%p907_p5), %s1015_s17, 16, %s1013_s20, %s570_s26  }
 0x26a PF: > { %p704_p1 = scmp.ge.s32.totalorder %s825_s24, 2  ;;  %s594_s16 = sand.u32 1, %s813_s21  }
 0x26b   : > { %s595_s18 = scalar_lea.sflag [#allocation3], %s594_s16 }
 0x26c   : > { %p701_p2 = pnand %p704_p1, %p911_p6 }
 0x26e   : > { %808 = dma.done.wait (!%p701_p2), %s595_s18, 16  }
 0x26f   : > { %810 = vsyncadd (!%p701_p2), %s595_s18, 4294967280  ;;  %p16_p3 = scmp.ge.s32.totalorder %s894_s27, 4   ;;  %s1064_s21 = smov %s817_s22 }
 0x270   : > { %s1065_s22 = smov %s821_s23  ;;  %s1066_s23 = smov %s905_s30 }
 0x271   : > { %s1067_s24 = smov %s894_s27  ;;  %18 = sbr.rel (!%p16_p3) target bundleno = 3 (0x3), region = 79 }
 0x278   :  { %599 = vsyncpa [#allocation3], 1 }
 0x279   :  { %601 = vsyncpa [#allocation3 + $0x1], 1 }

</bundles_post_ra>
